<compile_context>
chip_gen: v6e
topology: v6e:2x2x1
jax: 0.10.0
libtpu: 0.0.40
codegen_flags: <defaults>
</compile_context>

<pallas_src>
import functools

import jax
import jax.numpy as jnp
from jax.experimental import pallas as pl
from jax.experimental.pallas import tpu as pltpu


def _round_up(v, m):
    return ((v + m - 1) // m) * m


def _largest_divisor_at_most(n, cap):
    best = 1
    for d in range(1, n + 1):
        if n % d == 0 and d <= cap:
            best = d
    return best


def encoder_gcn_kernel(x_ref, adj_ref, w1_ref, w4_ref, z_ref, zg_ref, *, n_valid):
    """One grid step processes Bblk graphs (lane-dense padded shapes)."""
    x = x_ref[...]        # (Bblk, Np, Fp)  bf16
    adj = adj_ref[...]    # (Bblk, Np, Np)  bf16
    w1 = w1_ref[...]      # (Fp, Hp)        bf16
    w4 = w4_ref[...]      # (Hp, Op)        bf16

    bblk, np_, fp = x.shape
    hp = w1.shape[1]
    op = w4.shape[1]

    # ----- gc1: leaky_relu( (adj @ x) @ W1 ) -----
    ax = jnp.einsum("bnm,bmf->bnf", adj, x,
                    preferred_element_type=jnp.float32)            # (Bblk,Np,Fp) f32
    h = jnp.dot(ax.reshape(bblk * np_, fp).astype(jnp.bfloat16), w1,
                preferred_element_type=jnp.float32)                # (Bblk*Np,Hp) f32
    h = jnp.where(h > 0, h, 0.5 * h)                               # LeakyReLU(0.5)

    # TODO(synk): nn.Dropout is identity in eval mode; training-mode stochastic
    # masking is not implemented here.

    h3 = h.reshape(bblk, np_, hp).astype(jnp.bfloat16)

    # ----- gc4: contract the N^2-sized matmul against the smaller feature dim -----
    if op < hp:
        hw = jnp.dot(h3.reshape(bblk * np_, hp), w4,
                     preferred_element_type=jnp.float32)           # (Bblk*Np,Op)
        hw3 = hw.reshape(bblk, np_, op).astype(jnp.bfloat16)
        z = jnp.einsum("bnm,bmo->bno", adj, hw3,
                       preferred_element_type=jnp.float32)         # (Bblk,Np,Op)
    else:
        ah = jnp.einsum("bnm,bmh->bnh", adj, h3,
                        preferred_element_type=jnp.float32)        # (Bblk,Np,Hp)
        z = jnp.dot(ah.reshape(bblk * np_, hp).astype(jnp.bfloat16), w4,
                    preferred_element_type=jnp.float32
                    ).reshape(bblk, np_, op)                       # (Bblk,Np,Op)

    z_ref[...] = z

    # ----- graph readout: max over (real) nodes -----
    if np_ > n_valid:
        node = jax.lax.broadcasted_iota(jnp.int32, (bblk, np_, op), 1)
        zmask = jnp.where(node < n_valid, z, -jnp.inf)
    else:
        zmask = z
    zg_ref[...] = jnp.max(zmask, axis=1, keepdims=True)            # (Bblk,1,Op)


def proj_head_kernel(zg_ref, wp1_ref, bp1_ref, wp2_ref, bp2_ref, out_ref):
    """Batched projection head: one (B, Op) x (Op, Op) matmul chain."""
    zg = zg_ref[...]                                               # (B, Op) f32
    p = jnp.dot(zg, wp1_ref[...], preferred_element_type=jnp.float32) + bp1_ref[...]
    p = jnp.maximum(p, 0.0)
    p = jnp.dot(p, wp2_ref[...], preferred_element_type=jnp.float32) + bp2_ref[...]
    out_ref[...] = p


def encoder_forward(x, adj, params):
    """x: (B, N, F) float32, adj: (B, N, N) float32.

    params: dict with PyTorch-convention shapes:
      gc1_w  (H, F), gc4_w (O, H), proj1_w (O, O), proj1_b (O,),
      proj2_w (O, O), proj2_b (O,)
    Returns (z: (B, N, O), z_g: (B, O)).
    """
    B, N, F = x.shape
    H = params["gc1_w"].shape[0]
    O = params["gc4_w"].shape[0]

    # Padded (lane/sublane dense) dims.
    Np = _round_up(N, 8)
    Fp = _round_up(F, 128)
    Hp = _round_up(H, 128)
    Op = _round_up(O, 128)

    # Zero-pad inputs / weights; bf16 for the MXU streams (f32 accumulation in-kernel).
    x_p = jnp.pad(x.astype(jnp.bfloat16), ((0, 0), (0, Np - N), (0, Fp - F)))
    adj_p = jnp.pad(adj.astype(jnp.bfloat16), ((0, 0), (0, Np - N), (0, Np - N)))
    w1_p = jnp.pad(params["gc1_w"].T.astype(jnp.bfloat16), ((0, Fp - F), (0, Hp - H)))
    w4_p = jnp.pad(params["gc4_w"].T.astype(jnp.bfloat16), ((0, Hp - H), (0, Op - O)))
    # Projection head stays f32 (tiny, accuracy-sensitive).
    wp1_p = jnp.pad(params["proj1_w"].T.astype(jnp.float32), ((0, Op - O), (0, Op - O)))
    bp1_p = jnp.pad(params["proj1_b"].reshape(1, O).astype(jnp.float32), ((0, 0), (0, Op - O)))
    wp2_p = jnp.pad(params["proj2_w"].T.astype(jnp.float32), ((0, Op - O), (0, Op - O)))
    bp2_p = jnp.pad(params["proj2_b"].reshape(1, O).astype(jnp.float32), ((0, 0), (0, Op - O)))

    # Batch several graphs per grid step so Bblk*Np rows feed the MXU, capped by
    # a conservative VMEM budget (double-buffered blocks must fit v7x's 64 MiB).
    target_bblk = max(1, pl.cdiv(256, Np))
    per_graph_bytes = Np * Np * 2 + Np * Fp * 2 + Np * Op * 4 + Op * 4
    vmem_block_budget = 12 * 1024 * 1024
    bblk_cap = max(1, min(target_bblk, vmem_block_budget // max(1, per_graph_bytes)))
    bblk = _largest_divisor_at_most(B, bblk_cap)
    grid = (B // bblk,)

    block_bytes = (bblk * per_graph_bytes + Fp * Hp * 2 + Hp * Op * 2)
    vmem_limit = int(min(48 * 1024 * 1024, max(8 * 1024 * 1024, 4 * block_bytes)))

    flops = 2 * B * (Np * Np * Fp + Np * Fp * Hp + Np * Np * Hp + Np * Hp * Op)
    bytes_accessed = (x_p.size * 2 + adj_p.size * 2 + w1_p.size * 2 + w4_p.size * 2
                      + B * Np * Op * 4 + B * Op * 4)
    cost = pl.CostEstimate(flops=flops, transcendentals=0,
                           bytes_accessed=bytes_accessed)

    kernel = functools.partial(encoder_gcn_kernel, n_valid=N)

    z_pad, zg_pad = pl.pallas_call(
        kernel,
        out_shape=(
            jax.ShapeDtypeStruct((B, Np, Op), jnp.float32),
            jax.ShapeDtypeStruct((B, 1, Op), jnp.float32),
        ),
        grid_spec=pltpu.PrefetchScalarGridSpec(
            num_scalar_prefetch=0,
            grid=grid,
            in_specs=[
                pl.BlockSpec((bblk, Np, Fp), lambda b: (b, 0, 0)),   # x
                pl.BlockSpec((bblk, Np, Np), lambda b: (b, 0, 0)),   # adj
                pl.BlockSpec((Fp, Hp), lambda b: (0, 0)),            # W1
                pl.BlockSpec((Hp, Op), lambda b: (0, 0)),            # W4
            ],
            out_specs=[
                pl.BlockSpec((bblk, Np, Op), lambda b: (b, 0, 0)),   # z (lane-dense)
                pl.BlockSpec((bblk, 1, Op), lambda b: (b, 0, 0)),    # z_g (pre-proj)
            ],
        ),
        compiler_params=pltpu.CompilerParams(
            dimension_semantics=("parallel",),
            vmem_limit_bytes=vmem_limit),
        cost_estimate=cost,
    )(x_p, adj_p, w1_p, w4_p)

    # Projection head: one batched call over all graphs (M = B, not M = 1 per step).
    zg2d = zg_pad.reshape(B, Op)
    zg_proj = pl.pallas_call(
        proj_head_kernel,
        out_shape=jax.ShapeDtypeStruct((B, Op), jnp.float32),
        grid_spec=pltpu.PrefetchScalarGridSpec(
            num_scalar_prefetch=0,
            grid=(1,),
            in_specs=[
                pl.BlockSpec((B, Op), lambda i: (0, 0)),
                pl.BlockSpec((Op, Op), lambda i: (0, 0)),
                pl.BlockSpec((1, Op), lambda i: (0, 0)),
                pl.BlockSpec((Op, Op), lambda i: (0, 0)),
                pl.BlockSpec((1, Op), lambda i: (0, 0)),
            ],
            out_specs=pl.BlockSpec((B, Op), lambda i: (0, 0)),
        ),
    )(zg2d, wp1_p, bp1_p, wp2_p, bp2_p)

    z = z_pad[:, :N, :O]
    z_g = zg_proj[:, :O]
    return z, z_g


def reference_forward(x, adj, params):
    """Pure-JAX (f32) reference matching the PyTorch module."""
    h = jnp.einsum("bnm,bmf->bnf", adj, x)
    h = h @ params["gc1_w"].T
    h = jnp.where(h > 0, h, 0.5 * h)
    h = jnp.einsum("bnm,bmh->bnh", adj, h)
    z = h @ params["gc4_w"].T
    zg = jnp.max(z, axis=1)
    p = zg @ params["proj1_w"].T + params["proj1_b"]
    p = jnp.maximum(p, 0.0)
    p = p @ params["proj2_w"].T + params["proj2_b"]
    return z, p


if __name__ == "__main__":
    # Small shapes consistent with the module.
    B, N, FEAT, HID, OUT = 2, 8, 16, 32, 32

    key = jax.random.PRNGKey(0)
    keys = jax.random.split(key, 8)

    x = jax.random.normal(keys[0], (B, N, FEAT), dtype=jnp.float32)
    # Symmetric-ish dense "adjacency" for a deterministic synthetic test.
    a = jax.random.uniform(keys[1], (B, N, N), dtype=jnp.float32)
    adj = 0.5 * (a + jnp.swapaxes(a, 1, 2))

    params = {
        "gc1_w":  0.1 * jax.random.normal(keys[2], (HID, FEAT), jnp.float32),
        "gc4_w":  0.1 * jax.random.normal(keys[3], (OUT, HID), jnp.float32),
        "proj1_w": 0.1 * jax.random.normal(keys[4], (OUT, OUT), jnp.float32),
        "proj1_b": 0.1 * jax.random.normal(keys[5], (OUT,), jnp.float32),
        "proj2_w": 0.1 * jax.random.normal(keys[6], (OUT, OUT), jnp.float32),
        "proj2_b": 0.1 * jax.random.normal(keys[7], (OUT,), jnp.float32),
    }

    z, z_g = encoder_forward(x, adj, params)
    jax.block_until_ready((z, z_g))

    z_ref, zg_ref = reference_forward(x, adj, params)
    assert z.shape == (B, N, OUT) and z_g.shape == (B, OUT)
    # bf16 MXU inputs (f32 accumulation) -> slightly widened tolerance vs f32 ref.
    assert jnp.allclose(z, z_ref, atol=5e-2, rtol=5e-2)
    assert jnp.allclose(z_g, zg_ref, atol=5e-2, rtol=5e-2)

    print("KERNEL_OK")
</pallas_src>

<mosaic_0001>
module attributes {stable_mosaic.version = 11 : i64} {
  func.func @encoder_gcn_kernel(%arg0: i32, %arg1: memref<2x8x128xbf16, #tpu.memory_space<vmem>>, %arg2: memref<2x8x8xbf16, #tpu.memory_space<vmem>>, %arg3: memref<128x128xbf16, #tpu.memory_space<vmem>>, %arg4: memref<128x128xbf16, #tpu.memory_space<vmem>>, %arg5: memref<2x8x128xf32, #tpu.memory_space<vmem>>, %arg6: memref<2x1x128xf32, #tpu.memory_space<vmem>>) attributes {dimension_semantics = [#tpu.dimension_semantics<parallel>], iteration_bounds = array<i64: 1>, scalar_prefetch = 0 : i64, scratch_operands = 0 : i64, tpu.core_type = #tpu.core_type<tc>, window_params = [{transform_indices = @transform_0, window_bounds = array<i64: 2, 8, 128>}, {transform_indices = @transform_1, window_bounds = array<i64: 2, 8, 8>}, {pipeline_mode = #tpu.pipeline_mode<synchronous>, transform_indices = @transform_2, window_bounds = array<i64: 128, 128>}, {pipeline_mode = #tpu.pipeline_mode<synchronous>, transform_indices = @transform_3, window_bounds = array<i64: 128, 128>}, {transform_indices = @transform_4, window_bounds = array<i64: 2, 8, 128>}, {transform_indices = @transform_5, window_bounds = array<i64: 2, 1, 128>}]} {
    %c0 = arith.constant 0 : index
    %c0_0 = arith.constant 0 : index
    %c0_1 = arith.constant 0 : index
    %0 = vector.load %arg1[%c0, %c0_0, %c0_1] : memref<2x8x128xbf16, #tpu.memory_space<vmem>>, vector<2x8x128xbf16>
    %c0_2 = arith.constant 0 : index
    %c0_3 = arith.constant 0 : index
    %c0_4 = arith.constant 0 : index
    %1 = vector.load %arg2[%c0_2, %c0_3, %c0_4] : memref<2x8x8xbf16, #tpu.memory_space<vmem>>, vector<2x8x8xbf16>
    %c0_5 = arith.constant 0 : index
    %c0_6 = arith.constant 0 : index
    %2 = vector.load %arg3[%c0_5, %c0_6] : memref<128x128xbf16, #tpu.memory_space<vmem>>, vector<128x128xbf16>
    %c0_7 = arith.constant 0 : index
    %c0_8 = arith.constant 0 : index
    %3 = vector.load %arg4[%c0_7, %c0_8] : memref<128x128xbf16, #tpu.memory_space<vmem>>, vector<128x128xbf16>
    "tpu.trace_start"() <{level = 10 : i32, message = "bnm,bmf->bnf"}> : () -> ()
    %cst = arith.constant dense<0.000000e+00> : vector<2x8x128xf32>
    %4 = tpu.matmul %1, %0, %cst {dimension_numbers = #tpu.dot_dimension_numbers<[2], [1], [1], [2], [0, 0, 0, 1, 1, 2], [0], [0]>} : vector<2x8x8xbf16>, vector<2x8x128xbf16>, vector<2x8x128xf32> -> vector<2x8x128xf32>
    "tpu.trace_stop"() : () -> ()
    %5 = vector.shape_cast %4 : vector<2x8x128xf32> to vector<16x128xf32>
    %6 = arith.truncf %5 : vector<16x128xf32> to vector<16x128xbf16>
    %cst_9 = arith.constant dense<0.000000e+00> : vector<16x128xf32>
    %7 = tpu.matmul %6, %2, %cst_9 {dimension_numbers = #tpu.dot_dimension_numbers<[1], [0], [0], [1], [0, 0, 1, 1], [], []>} : vector<16x128xbf16>, vector<128x128xbf16>, vector<16x128xf32> -> vector<16x128xf32>
    %cst_10 = arith.constant 0.000000e+00 : f32
    %8 = vector.broadcast %cst_10 : f32 to vector<16x128xf32>
    %9 = arith.cmpf ogt, %7, %8 : vector<16x128xf32>
    %cst_11 = arith.constant 5.000000e-01 : f32
    %10 = vector.broadcast %cst_11 : f32 to vector<16x128xf32>
    %11 = arith.mulf %10, %7 : vector<16x128xf32>
    %12 = arith.select %9, %7, %11 : vector<16x128xi1>, vector<16x128xf32>
    %13 = vector.shape_cast %12 : vector<16x128xf32> to vector<2x8x128xf32>
    %14 = arith.truncf %13 : vector<2x8x128xf32> to vector<2x8x128xbf16>
    "tpu.trace_start"() <{level = 10 : i32, message = "bnm,bmh->bnh"}> : () -> ()
    %cst_12 = arith.constant dense<0.000000e+00> : vector<2x8x128xf32>
    %15 = tpu.matmul %1, %14, %cst_12 {dimension_numbers = #tpu.dot_dimension_numbers<[2], [1], [1], [2], [0, 0, 0, 1, 1, 2], [0], [0]>} : vector<2x8x8xbf16>, vector<2x8x128xbf16>, vector<2x8x128xf32> -> vector<2x8x128xf32>
    "tpu.trace_stop"() : () -> ()
    %16 = vector.shape_cast %15 : vector<2x8x128xf32> to vector<16x128xf32>
    %17 = arith.truncf %16 : vector<16x128xf32> to vector<16x128xbf16>
    %cst_13 = arith.constant dense<0.000000e+00> : vector<16x128xf32>
    %18 = tpu.matmul %17, %3, %cst_13 {dimension_numbers = #tpu.dot_dimension_numbers<[1], [0], [0], [1], [0, 0, 1, 1], [], []>} : vector<16x128xbf16>, vector<128x128xbf16>, vector<16x128xf32> -> vector<16x128xf32>
    %19 = vector.shape_cast %18 : vector<16x128xf32> to vector<2x8x128xf32>
    %c0_14 = arith.constant 0 : index
    %c0_15 = arith.constant 0 : index
    %c0_16 = arith.constant 0 : index
    %20 = vector.load %arg5[%c0_14, %c0_15, %c0_16] : memref<2x8x128xf32, #tpu.memory_space<vmem>>, vector<2x8x128xf32>
    tpu.vector_store %arg5[%c0_14, %c0_15, %c0_16], %19 {strides = array<i32>} : memref<2x8x128xf32, #tpu.memory_space<vmem>>, vector<2x8x128xf32>,
    %cst_17 = arith.constant dense<0xFF800000> : vector<2x128xf32>
    %21 = vector.multi_reduction <maximumf>, %19, %cst_17 [1] : vector<2x8x128xf32> to vector<2x128xf32>
    %22 = vector.shape_cast %21 : vector<2x128xf32> to vector<2x1x128xf32>
    %c0_18 = arith.constant 0 : index
    %c0_19 = arith.constant 0 : index
    %c0_20 = arith.constant 0 : index
    %23 = vector.load %arg6[%c0_18, %c0_19, %c0_20] : memref<2x1x128xf32, #tpu.memory_space<vmem>>, vector<2x1x128xf32>
    tpu.vector_store %arg6[%c0_18, %c0_19, %c0_20], %22 {strides = array<i32>} : memref<2x1x128xf32, #tpu.memory_space<vmem>>, vector<2x1x128xf32>,
    return
  }
  func.func @transform_0(%arg0: i32) -> (i32, i32, i32) {
    %c0_i32 = arith.constant 0 : i32
    %c0_i32_0 = arith.constant 0 : i32
    %c0_i32_1 = arith.constant 0 : i32
    return %arg0, %c0_i32, %c0_i32_0 : i32, i32, i32
  }
  func.func @transform_1(%arg0: i32) -> (i32, i32, i32) {
    %c0_i32 = arith.constant 0 : i32
    %c0_i32_0 = arith.constant 0 : i32
    %c0_i32_1 = arith.constant 0 : i32
    return %arg0, %c0_i32, %c0_i32_0 : i32, i32, i32
  }
  func.func @transform_2(%arg0: i32) -> (i32, i32) {
    %c0_i32 = arith.constant 0 : i32
    %c0_i32_0 = arith.constant 0 : i32
    %c0_i32_1 = arith.constant 0 : i32
    return %c0_i32, %c0_i32_0 : i32, i32
  }
  func.func @transform_3(%arg0: i32) -> (i32, i32) {
    %c0_i32 = arith.constant 0 : i32
    %c0_i32_0 = arith.constant 0 : i32
    %c0_i32_1 = arith.constant 0 : i32
    return %c0_i32, %c0_i32_0 : i32, i32
  }
  func.func @transform_4(%arg0: i32) -> (i32, i32, i32) {
    %c0_i32 = arith.constant 0 : i32
    %c0_i32_0 = arith.constant 0 : i32
    %c0_i32_1 = arith.constant 0 : i32
    return %arg0, %c0_i32, %c0_i32_0 : i32, i32, i32
  }
  func.func @transform_5(%arg0: i32) -> (i32, i32, i32) {
    %c0_i32 = arith.constant 0 : i32
    %c0_i32_0 = arith.constant 0 : i32
    %c0_i32_1 = arith.constant 0 : i32
    return %arg0, %c0_i32, %c0_i32_0 : i32, i32, i32
  }
}

</mosaic_0001>

<bundles_post_ra>
// kernel: tpu_custom_call.1
= control target key start
LH: loop header
LB: loop body
LE: loop exit
PB: predicated region body
PF: predicated region fallthrough
CT: control target
= control target key end

     0   :  { %11 = vsyncpa [#allocation3], 0  ;;  %s916_s0 = inlined_call_operand.hbm [shape: bf16[2,8,128], index: 0, kind: input, shape index: {}]   ;;  %s917_s1 = inlined_call_operand.hbm [shape: bf16[2,8,8], index: 1, kind: input, shape index: {}]   ;;  %s918_s2 = inlined_call_operand.hbm [shape: bf16[128,128], index: 2, kind: input, shape index: {}]   ;;  %s919_s3 = inlined_call_operand.hbm [shape: bf16[128,128], index: 3, kind: input, shape index: {}]   ;;  %s920_s4 = inlined_call_operand.hbm [shape: f32[2,8,128], index: 4, kind: output, shape index: {0}]   ;;  %s921_s5 = inlined_call_operand.hbm [shape: f32[2,1,128], index: 5, kind: output, shape index: {1}]  }
   0x1   :  { %12 = vsyncpa [#allocation6], 0 }
   0x2   :  { %13 = vsyncpa [#allocation9], 0 }
   0x3   :  { %14 = vsyncpa [#allocation4], 0 }
   0x4   :  { %15 = vsyncpa [#allocation12], 0  ;;  %s802_s18 = smov [#allocation5]   ;;  %s803_s20 = smov [#allocation2]  }
   0x5   :  { %s33_s19 = sshll.u32 %s802_s18, 4  ;;  %s21_s21 = sshll.u32 %s803_s20, 4  ;;  %s34_s19 = int_to_ptr.vmem [resolvable:$true] %s33_s19  ;;  %s22_s21 = int_to_ptr.vmem [resolvable:$true] %s21_s21 }
   0x6   :  { %s680_s22 = scalar_lea.vmem %s34_s19, 128  ;;  %p685_p1 = scmp.lt.s32.totalorder %s34_s19, %s34_s19 }
   0x7   :  { %p681_p0 = scmp.ne.s32.totalorder %s34_s19, %s680_s22  ;;  %p686_p2 = scmp.lt.s32.totalorder %s680_s22, %s680_s22 }
   0x9   :  { %p687_p3 = por %p686_p2, %p685_p1 }
   0xb   :  { %p688_p4 = pnand %p687_p3, %p681_p0 }
   0xd   :  { %691 = shalt.err (!%p688_p4)
}
   0xe   :  { %s804_s23 = smov 64   ;;  %s805_s24 = smov 4  }
   0xf   :  { %39 = dma.hbm_to_vmem [thread:$0]  %s917_s1, 128, %s34_s19, [#allocation6], %s804_s23, %s804_s23, %s805_s24  }
  0x10   :  { %s700_s27 = scalar_lea.vmem %s22_s21, 128  ;;  %p705_p6 = scmp.lt.s32.totalorder %s22_s21, %s22_s21 }
  0x11   :  { %p701_p5 = scmp.ne.s32.totalorder %s22_s21, %s700_s27  ;;  %p706_p7 = scmp.lt.s32.totalorder %s700_s27, %s700_s27 }
  0x13   :  { %p707_p8 = por %p706_p7, %p705_p6 }
  0x15   :  { %p708_p9 = pnand %p707_p8, %p701_p5 }
  0x17   :  { %711 = shalt.err (!%p708_p9)
}
  0x18   :  { %27 = dma.hbm_to_vmem [thread:$0]  %s916_s0, 128, %s22_s21, [#allocation3], %s804_s23, %s804_s23, %s805_s24  }
  0x19   :  { %s806_s30 = smov [#allocation7]   ;;  %s807_s7 = smov [#allocation8]  }
  0x1a   :  { %s45_s6 = sshll.u32 %s806_s30, 4  ;;  %s57_s8 = sshll.u32 %s807_s7, 4  ;;  %s46_s6 = int_to_ptr.vmem [resolvable:$true] %s45_s6  ;;  %s58_s8 = int_to_ptr.vmem [resolvable:$true] %s57_s8 }
  0x1b   :  { %s720_s1 = scalar_lea.vmem %s46_s6, 1024  ;;  %p725_p11 = scmp.lt.s32.totalorder %s46_s6, %s46_s6 }
  0x1c   :  { %p721_p10 = scmp.ne.s32.totalorder %s46_s6, %s720_s1  ;;  %p726_p12 = scmp.lt.s32.totalorder %s720_s1, %s720_s1 }
  0x1e   :  { %p727_p13 = por %p726_p12, %p725_p11 }
  0x20   :  { %p728_p0 = pnand %p727_p13, %p721_p10 }
  0x22   :  { %731 = shalt.err (!%p728_p0)
}
  0x23   :  { %51 = dma.hbm_to_vmem [thread:$0]  %s918_s2, 1024, %s46_s6, [#allocation6], %s804_s23, %s804_s23, %s805_s24  }
  0x24   :  { %s740_s0 = scalar_lea.vmem %s58_s8, 1024  ;;  %p745_p2 = scmp.lt.s32.totalorder %s58_s8, %s58_s8 }
  0x25   :  { %p741_p1 = scmp.ne.s32.totalorder %s58_s8, %s740_s0  ;;  %p746_p3 = scmp.lt.s32.totalorder %s740_s0, %s740_s0 }
  0x27   :  { %p747_p4 = por %p746_p3, %p745_p2 }
  0x29   :  { %p748_p5 = pnand %p747_p4, %p741_p1 }
  0x2b   :  { %751 = shalt.err (!%p748_p5)
}
  0x2c   :  { %63 = dma.hbm_to_vmem [thread:$0]  %s919_s3, 1024, %s58_s8, [#allocation9], %s804_s23, %s804_s23, %s805_s24  }
  0x2d   :  { %792 = dma.done.wait [#allocation3], 128  }
  0x2e   :  { %793 = vsyncadd [#allocation3], 4294967168 }
  0x2f   :  { %794 = dma.done.wait [#allocation6], 1152  }
  0x30   :  { %795 = vsyncadd [#allocation6], 4294966144 }
  0x31   :  { %796 = dma.done.wait [#allocation9], 1024  }
  0x32   :  { %797 = vsyncadd [#allocation9], 4294966272  ;;  %v808_v0 = vmov 0.0   ;;  %vm809_vm0 = vmmov 0   ;;  %vm117_vm1 = vcmask 1043456   ;;  %vm113_vm2 = vcmask 64512  }
  0x33   :  { %578 = vmatprep.subr.bf16.mxu0 %v808_v0  ;;  %580 = vmatprep.mubr.msk.bf16.mxu0 %vm809_vm0, %v808_v0  ;;  %v77_v1 = vld [vmem:[#allocation2] sm:$0xf]  ;;  %v78_v2 = vld [vmem:[#allocation2 + $0x4] sm:$0xf]  ;;  %v79_v4 = vld [vmem:[#allocation5] sm:$0xf] }
  0x34   :  { %610 = vmatprep.subr.bf16.mxu1 %v808_v0  ;;  %612 = vmatprep.mubr.msk.bf16.mxu1 %vm809_vm0, %v808_v0  ;;  %v119_v3 = vsel %vm117_vm1, %v77_v1, 0  ;;  %v165_v5 = vsel %vm117_vm1, %v78_v2, 0  ;;  %v80_v6 = vld [vmem:[#allocation5 + $0x4] sm:$0xf]  ;;  %v657_v8 = vld [vmem:[#allocation7 + $0x30] sm:$0xff]   ;;  %v658_v9 = vld [vmem:[#allocation7 + $0x28] sm:$0xff]  }
  0x35   :  { %579 = vmatpush3.bf16.msra.mxu0 %v119_v3  ;;  %v656_v7 = vld [vmem:[#allocation7 + $0x38] sm:$0xff]   ;;  %v659_v10 = vld [vmem:[#allocation7 + $0x20] sm:$0xff]   ;;  %v661_v12 = vld [vmem:[#allocation7 + $0x10] sm:$0xff]   ;;  %s810_s2 = smov [#allocation10]  }
  0x36   :  { %584 = vmatprep.subr.bf16.mxu0 %v808_v0  ;;  %v660_v11 = vld [vmem:[#allocation7 + $0x18] sm:$0xff]   ;;  %v662_v13 = vld [vmem:[#allocation7 + $0x8] sm:$0xff]   ;;  %v663_v14 = vld [vmem:[#allocation7] sm:$0xff]   ;;  %s502_s3 = sshll.u32 %s810_s2, 4  ;;  %s503_s3 = int_to_ptr.vmem [resolvable:$true] %s502_s3 }
  0x37   :  { %v664_v36 = vld [vmem:[#allocation8 + $0x38] sm:$0xff]   ;;  %v665_v37 = vld [vmem:[#allocation8 + $0x30] sm:$0xff]   ;;  %v666_v38 = vld [vmem:[#allocation8 + $0x28] sm:$0xff]   ;;  %s752_s13 = scalar_lea.vmem %s503_s3, 256  ;;  %p757_p7 = scmp.lt.s32.totalorder %s503_s3, %s503_s3 }
  0x38   :  { %581 = vmatmul.mubr.msk.bf16.vlgmr.msra.gmra.mxu0 %vm113_vm2, %v79_v4  ;;  %v667_v39 = vld [vmem:[#allocation8 + $0x20] sm:$0xff]   ;;  %v668_v40 = vld [vmem:[#allocation8 + $0x18] sm:$0xff]   ;;  %v669_v41 = vld [vmem:[#allocation8 + $0x10] sm:$0xff]   ;;  %p753_p6 = scmp.ne.s32.totalorder %s503_s3, %s752_s13  ;;  %p758_p8 = scmp.lt.s32.totalorder %s752_s13, %s752_s13 }
  0x39   :  { %585 = vmatpush3.bf16.msra.mxu0 %v165_v5  ;;  %586 = vmatprep.mubr.msk.bf16.mxu0 %vm809_vm0, %v808_v0  ;;  %v670_v42 = vld [vmem:[#allocation8 + $0x8] sm:$0xff]   ;;  %v671_v43 = vld [vmem:[#allocation8] sm:$0xff]  }
  0x3a   :  { %590 = vmatprep.subr.bf16.mxu0 %v808_v0  ;;  %p759_p9 = por %p758_p8, %p757_p7 }
  0x3c   :  { %p760_p10 = pnand %p759_p9, %p753_p6 }
  0x40   :  { %587 = vmatmul.mubr.msk.bf16.vlgmr.msra.gmra.mxu0 %vm113_vm2, %v80_v6 }
  0x41   :  { %591 = vmatpush3.bf16.msra.mxu0 %v656_v7  ;;  %606 = vmatprep.mubr.msk.bf16.mxu0 %vm809_vm0, %v808_v0 }
  0x42   :  { %592 = vmatprep.subr.bf16.mxu0 %v808_v0 }
  0x45   :  { %593 = vmatpush3.bf16.msra.mxu0 %v657_v8 }
  0x46   :  { %594 = vmatprep.subr.bf16.mxu0 %v808_v0 }
  0x49   :  { %595 = vmatpush3.bf16.msra.mxu0 %v658_v9 }
  0x4a   :  { %596 = vmatprep.subr.bf16.mxu0 %v808_v0 }
  0x4d   :  { %597 = vmatpush3.bf16.msra.mxu0 %v659_v10 }
  0x4e   :  { %598 = vmatprep.subr.bf16.mxu0 %v808_v0 }
  0x51   :  { %599 = vmatpush3.bf16.msra.mxu0 %v660_v11 }
  0x52   :  { %600 = vmatprep.subr.bf16.mxu0 %v808_v0 }
  0x55   :  { %601 = vmatpush3.bf16.msra.mxu0 %v661_v12 }
  0x56   :  { %602 = vmatprep.subr.bf16.mxu0 %v808_v0 }
  0x59   :  { %603 = vmatpush3.bf16.msra.mxu0 %v662_v13 }
  0x5a   :  { %604 = vmatprep.subr.bf16.mxu0 %v808_v0 }
  0x5d   :  { %605 = vmatpush3.bf16.msra.mxu0 %v663_v14 }
  0xf8   :  { %v155_v15 = vpop.f32.mrf.mxu0 }
  0xfa   :  { %v582_v16 = vpop.f32.mrf.mxu0 }
  0xfc   :  { %v158_v17 = vpop.f32.mrf.mxu0 }
  0xfe   :  { %v583_v18 = vpop.f32.mrf.mxu0 }
 0x100   :  { %v201_v19 = vpop.f32.mrf.mxu0 }
 0x101   :  { %v207_v20 = vpack.c.bf16 %v201_v19, %v155_v15 }
 0x102   :  { %v588_v21 = vpop.f32.mrf.mxu0 }
 0x103   :  { %607 = vmatmul.mubr.bf16.vlgmr.msra.gmra.mxu0 %v207_v20 }
 0x104   :  { %v204_v22 = vpop.f32.mrf.mxu0 }
 0x106   :  { %v589_v23 = vpop.f32.mrf.mxu0 }
 0x1c3   :  { %v290_v24 = vpop.f32.mrf.mxu0 }
 0x1c4   :  { %vm297_vm3 = vcmp.gt.f32.partialorder %v290_v24, 0.0  ;;  %v299_v25 = vmul.f32 0.5, %v290_v24 }
 0x1c5   :  { %v608_v26 = vpop.f32.mrf.mxu0 }
 0x1c6   :  { %v301_v27 = vsel %vm297_vm3, %v290_v24, %v299_v25 }
 0x1c7   :  { %v293_v28 = vpop.f32.mrf.mxu0  ;;  %v303_v29 = vpack.c.bf16 %v301_v27, %v301_v27 }
 0x1c8   :  { %vm298_vm4 = vcmp.gt.f32.partialorder %v293_v28, 0.0  ;;  %v300_v30 = vmul.f32 0.5, %v293_v28 }
 0x1c9   :  { %v609_v31 = vpop.f32.mrf.mxu0  ;;  %v306_v32 = vsel %vm117_vm1, %v303_v29, 0 }
 0x1ca   :  { %v302_v33 = vsel %vm298_vm4, %v293_v28, %v300_v30  ;;  %611 = vmatpush3.bf16.msra.mxu1 %v306_v32 }
 0x1cb   :  { %v304_v34 = vpack.c.bf16 %v302_v33, %v302_v33  ;;  %616 = vmatprep.subr.bf16.mxu1 %v808_v0 }
 0x1cd   :  { %613 = vmatmul.mubr.msk.bf16.vlgmr.msra.gmra.mxu1 %vm113_vm2, %v79_v4  ;;  %v349_v35 = vsel %vm117_vm1, %v304_v34, 0 }
 0x1ce   :  { %617 = vmatpush3.bf16.msra.mxu1 %v349_v35  ;;  %618 = vmatprep.mubr.msk.bf16.mxu1 %vm809_vm0, %v808_v0 }
 0x1cf   :  { %622 = vmatprep.subr.bf16.mxu1 %v808_v0 }
 0x1d5   :  { %619 = vmatmul.mubr.msk.bf16.vlgmr.msra.gmra.mxu1 %vm113_vm2, %v80_v6 }
 0x1d6   :  { %623 = vmatpush3.bf16.msra.mxu1 %v664_v36  ;;  %638 = vmatprep.mubr.msk.bf16.mxu1 %vm809_vm0, %v808_v0 }
 0x1d7   :  { %624 = vmatprep.subr.bf16.mxu1 %v808_v0 }
 0x1da   :  { %625 = vmatpush3.bf16.msra.mxu1 %v665_v37 }
 0x1db   :  { %626 = vmatprep.subr.bf16.mxu1 %v808_v0 }
 0x1de   :  { %627 = vmatpush3.bf16.msra.mxu1 %v666_v38 }
 0x1df   :  { %628 = vmatprep.subr.bf16.mxu1 %v808_v0 }
 0x1e2   :  { %629 = vmatpush3.bf16.msra.mxu1 %v667_v39 }
 0x1e3   :  { %630 = vmatprep.subr.bf16.mxu1 %v808_v0 }
 0x1e6   :  { %631 = vmatpush3.bf16.msra.mxu1 %v668_v40 }
 0x1e7   :  { %632 = vmatprep.subr.bf16.mxu1 %v808_v0 }
 0x1ea   :  { %633 = vmatpush3.bf16.msra.mxu1 %v669_v41 }
 0x1eb   :  { %634 = vmatprep.subr.bf16.mxu1 %v808_v0 }
 0x1ee   :  { %635 = vmatpush3.bf16.msra.mxu1 %v670_v42 }
 0x1ef   :  { %636 = vmatprep.subr.bf16.mxu1 %v808_v0 }
 0x1f2   :  { %637 = vmatpush3.bf16.msra.mxu1 %v671_v43 }
 0x28d   :  { %v342_v44 = vpop.f32.mrf.mxu1 }
 0x28f   :  { %v614_v45 = vpop.f32.mrf.mxu1 }
 0x291   :  { %v345_v46 = vpop.f32.mrf.mxu1 }
 0x293   :  { %v615_v47 = vpop.f32.mrf.mxu1 }
 0x295   :  { %v385_v48 = vpop.f32.mrf.mxu1 }
 0x296   :  { %v391_v49 = vpack.c.bf16 %v385_v48, %v342_v44 }
 0x297   :  { %v620_v50 = vpop.f32.mrf.mxu1 }
 0x298   :  { %639 = vmatmul.mubr.bf16.vlgmr.msra.gmra.mxu1 %v391_v49 }
 0x299   :  { %v388_v51 = vpop.f32.mrf.mxu1 }
 0x29b   :  { %v621_v52 = vpop.f32.mrf.mxu1 }
 0x358   :  { %v474_v53 = vpop.f32.mrf.mxu1 }
 0x359   :  { %481 = vst [vmem:[#allocation10] sm:$0xff] %v474_v53  ;;  %v483_v54 = vrot.slane %v474_v53, 4 }
 0x35a   :  { %v640_v55 = vpop.f32.mrf.mxu1 }
 0x35b   :  { %v484_v56 = vmax.f32 %v474_v53, %v483_v54 }
 0x35c   :  { %v477_v57 = vpop.f32.mrf.mxu1 }
 0x35d   :  { %v485_v58 = vrot.slane %v484_v56, 2  ;;  %482 = vst [vmem:[#allocation10 + $0x8] sm:$0xff] %v477_v57  ;;  %v489_v59 = vrot.slane %v477_v57, 4 }
 0x35e   :  { %v641_v60 = vpop.f32.mrf.mxu1 }
 0x35f   :  { %763 = shalt.err (!%p760_p10)
}
 0x360   :  { %s811_s14 = smov 128   ;;  %s812_s15 = smov 8   ;;  %v486_v61 = vmax.f32 %v484_v56, %v485_v58  ;;  %v490_v62 = vmax.f32 %v477_v57, %v489_v59 }
 0x361   :  { %508 = dma.vmem_to_hbm [thread:$0]  %s503_s3, 256, %s920_s4, [#allocation4], %s811_s14, %s811_s14, %s812_s15  }
 0x362   :  { %v487_v63 = vrot.slane %v486_v61, 1  ;;  %v491_v0 = vrot.slane %v490_v62, 2  ;;  %s813_s18 = smov [#allocation11]  }
 0x363   :  { %s514_s19 = sshll.u32 %s813_s18, 4  ;;  %s515_s19 = int_to_ptr.vmem [resolvable:$true] %s514_s19 }
 0x364   :  { %v488_v1 = vmax.f32 %v486_v61, %v487_v63  ;;  %v492_v2 = vmax.f32 %v490_v62, %v491_v0  ;;  %s772_s20 = scalar_lea.vmem %s515_s19, 32  ;;  %p777_p12 = scmp.lt.s32.totalorder %s515_s19, %s515_s19 }
 0x365   :  { %p773_p11 = scmp.ne.s32.totalorder %s515_s19, %s772_s20  ;;  %p778_p13 = scmp.lt.s32.totalorder %s772_s20, %s772_s20 }
 0x366   :  { %495 = vst [vmem:[#allocation11] sm:$0x1] %v488_v1  ;;  %v493_v3 = vrot.slane %v492_v2, 1 }
 0x367   :  { %p779_p0 = por %p778_p13, %p777_p12 }
 0x368   :  { %v494_v4 = vmax.f32 %v492_v2, %v493_v3 }
 0x369   :  { %p780_p1 = pnand %p779_p0, %p773_p11 }
 0x36a   :  { %496 = vst [vmem:[#allocation11 + $0x1] sm:$0x1] %v494_v4 }
 0x36b   :  { %783 = shalt.err (!%p780_p1)
}
 0x36c   :  { %s814_s4 = smov 16   ;;  %s815_s21 = smov 1  }
 0x36d   :  { %520 = dma.vmem_to_hbm [thread:$0]  %s515_s19, 32, %s921_s5, [#allocation12], %s814_s4, %s814_s4, %s815_s21  }
 0x36e   :  { %798 = dma.done.wait [#allocation4], 256  }
 0x36f   :  { %799 = vsyncadd [#allocation4], 4294967040 }
 0x370   :  { %800 = dma.done.wait [#allocation12], 32  }
 0x371   :  { %801 = vsyncadd [#allocation12], 4294967264 }
 0x372   :  { %527 = vsyncpa [#allocation3], 1 }
 0x373   :  { %528 = vsyncpa [#allocation6], 1 }
 0x374   :  { %529 = vsyncpa [#allocation9], 1 }
 0x375   :  { %530 = vsyncpa [#allocation4], 1 }
 0x376   :  { %531 = vsyncpa [#allocation12], 1 }

</bundles_post_ra>
